<compile_context>
chip_gen: v7x
topology: tpu7x:2x2x1
jax: 0.10.0
libtpu: 0.0.40
codegen_flags: <defaults>
</compile_context>

<pallas_src>
import functools

import jax
import jax.numpy as jnp
from jax.experimental import pallas as pl
from jax.experimental.pallas import tpu as pltpu


def _masked_lstm_seq_kernel(x_ref, mask_ref, h0_ref, c0_ref,
                            wx_ref, wh_ref, b_ref,
                            h_seq_ref, c_fin_ref,
                            h_sc, c_sc, *, H):
    """grid=(T,).  One masked LSTMCell step per grid point.

    x_ref    : (B, D_in)   current step input           (streamed per t)
    mask_ref : (B, 1)      float mask, >0 => run cell   (streamed per t)
    h0_ref   : (B, H)      initial hidden state         (resident)
    c0_ref   : (B, H)      initial cell state           (resident)
    wx_ref   : (D_in, 4H)  W_ih^T, gate order [i,f,g,o] (resident)
    wh_ref   : (H, 4H)     W_hh^T                       (resident)
    b_ref    : (1, 4H)     b_ih + b_hh  (always f32)    (resident)
    h_seq_ref: (B, H)      h_t output block for step t
    c_fin_ref: (B, H)      final cell state (written on last step only)
    h_sc,c_sc: (B, H) f32  VMEM-carried recurrent state
    """
    t = pl.program_id(0)

    @pl.when(t == 0)
    def _init():
        h_sc[...] = h0_ref[...]
        c_sc[...] = c0_ref[...]

    h = h_sc[...]                                   # (B, H) f32
    c = c_sc[...]                                   # (B, H) f32
    x_t = x_ref[...]                                # (B, D_in)

    # MXU operands in the weight dtype (bf16 on v6e/v7x if requested),
    # f32 accumulation; bias add is a single VPU broadcast-add.
    mx_dtype = wx_ref.dtype
    gates = (jnp.dot(x_t.astype(mx_dtype), wx_ref[...],
                     preferred_element_type=jnp.float32)
             + jnp.dot(h.astype(mx_dtype), wh_ref[...],
                       preferred_element_type=jnp.float32)
             + b_ref[...])                          # (B, 4H) f32

    # One EUP sigmoid pass over all 4H lanes; tanh only on the g slice.
    sig = jax.nn.sigmoid(gates)
    i_g = sig[:, 0 * H:1 * H]
    f_g = sig[:, 1 * H:2 * H]
    o_g = sig[:, 3 * H:4 * H]
    g_g = jnp.tanh(gates[:, 2 * H:3 * H])

    c_new = f_g * c + i_g * g_g
    h_new = o_g * jnp.tanh(c_new)

    # Masked update: rows with mask == 0 keep their old state (NaN-safe).
    keep = mask_ref[...] > 0.0                      # (B, 1) bool
    h_upd = jnp.where(keep, h_new, h)
    c_upd = jnp.where(keep, c_new, c)

    h_sc[...] = h_upd
    c_sc[...] = c_upd
    h_seq_ref[...] = h_upd                          # stream h_t out

    @pl.when(t == pl.num_programs(0) - 1)
    def _finalize():
        c_fin_ref[...] = c_upd


def prepare_params(w_ih, w_hh, b_ih, b_hh, *, weights_dtype=jnp.float32):
    """One-time parameter prep (OUTSIDE the per-step path).

    PyTorch nn.LSTMCell layout: weight_ih (4H, D_in), weight_hh (4H, H),
    bias_ih (4H,), bias_hh (4H,), gate order [i, f, g, o].
    Returns (W_x (D_in,4H), W_h (H,4H), b (1,4H)) pre-transposed for x @ W.
    Bias stays f32 (it is consumed by the VPU, not the MXU).
    """
    w_x = jnp.asarray(w_ih).T.astype(weights_dtype)
    w_h = jnp.asarray(w_hh).T.astype(weights_dtype)
    b = (jnp.asarray(b_ih) + jnp.asarray(b_hh)).reshape(1, -1).astype(jnp.float32)
    return w_x, w_h, b


@jax.jit
def masked_lstm_sequence(xs, masks, states, params):
    """Run T masked LSTMCell steps in ONE pallas_call.

    xs    : (T, B, D_in)
    masks : (T, B)         nonzero => row is valid at that step
    states: (h0, c0), each (B, H) float32
    params: (W_x, W_h, b) from prepare_params
    Returns (h_seq (T,B,H), (h_final, c_final)).
    """
    h0, c0 = states
    w_x, w_h, b = params
    T, B, D_in = xs.shape
    H = h0.shape[1]

    masks3 = (masks != 0).astype(jnp.float32).reshape(T, B, 1)
    kernel = functools.partial(_masked_lstm_seq_kernel, H=H)

    h_seq, c_fin = pl.pallas_call(
        kernel,
        out_shape=(jax.ShapeDtypeStruct((T, B, H), jnp.float32),
                   jax.ShapeDtypeStruct((B, H), jnp.float32)),
        grid=(T,),
        in_specs=[
            pl.BlockSpec((None, B, D_in), lambda t: (t, 0, 0)),   # x_t (streamed)
            pl.BlockSpec((None, B, 1),    lambda t: (t, 0, 0)),   # mask_t
            pl.BlockSpec((B, H),          lambda t: (0, 0)),      # h0 (resident)
            pl.BlockSpec((B, H),          lambda t: (0, 0)),      # c0 (resident)
            pl.BlockSpec((D_in, 4 * H),   lambda t: (0, 0)),      # W_x (resident)
            pl.BlockSpec((H, 4 * H),      lambda t: (0, 0)),      # W_h (resident)
            pl.BlockSpec((1, 4 * H),      lambda t: (0, 0)),      # bias (resident)
        ],
        out_specs=(
            pl.BlockSpec((None, B, H), lambda t: (t, 0, 0)),      # h_t stream
            pl.BlockSpec((B, H),       lambda t: (0, 0)),         # final c
        ),
        scratch_shapes=[pltpu.VMEM((B, H), jnp.float32),          # carried h
                        pltpu.VMEM((B, H), jnp.float32)],         # carried c
        compiler_params=pltpu.CompilerParams(
            dimension_semantics=("arbitrary",)),                  # time is a carry
    )(xs, masks3, h0, c0, w_x, w_h, b)

    h_fin = h_seq[-1]
    return h_seq, (h_fin, c_fin)


def decoder_forward(x, mask, states, params):
    """Module-equivalent single step: Decoder.forward(x, mask, states).

    Returns (output, (h_new, c_new)) with output == h_new (masked rows keep
    their old h/c).  Implemented as the T=1 case of the sequence kernel.
    """
    _, (h_fin, c_fin) = masked_lstm_sequence(x[None], mask[None], states, params)
    return h_fin, (h_fin, c_fin)


# ----------------------------- pure-JAX reference -----------------------------

def _reference_step(x, mask, states, params):
    h, c = states
    w_x, w_h, b = params
    H = h.shape[1]
    gates = x @ w_x.astype(jnp.float32) + h @ w_h.astype(jnp.float32) + b
    i = jax.nn.sigmoid(gates[:, 0 * H:1 * H])
    f = jax.nn.sigmoid(gates[:, 1 * H:2 * H])
    g = jnp.tanh(gates[:, 2 * H:3 * H])
    o = jax.nn.sigmoid(gates[:, 3 * H:4 * H])
    c_new = f * c + i * g
    h_new = o * jnp.tanh(c_new)
    keep = (mask != 0)[:, None]
    h_out = jnp.where(keep, h_new, h)
    c_out = jnp.where(keep, c_new, c)
    return h_out, (h_out, c_out)


def _reference_seq(xs, masks, states, params):
    h, c = states
    hs = []
    for t in range(xs.shape[0]):
        h, (h, c) = _reference_step(xs[t], masks[t], (h, c), params)
        hs.append(h)
    return jnp.stack(hs, axis=0), (h, c)


# ----------------------------------- demo -------------------------------------

if __name__ == "__main__":
    B, D_in, H, T = 8, 32, 32, 8   # small shapes; 4H = 128 lanes for the gates

    key = jax.random.PRNGKey(0)
    k_x, k_h, k_c, k_wih, k_whh, k_bih, k_bhh, k_m = jax.random.split(key, 8)

    xs = jax.random.normal(k_x, (T, B, D_in), dtype=jnp.float32)
    h0 = jax.random.normal(k_h, (B, H), dtype=jnp.float32)
    c0 = jax.random.normal(k_c, (B, H), dtype=jnp.float32)
    # Deterministic per-step masks: step t has (B - t mod B) leading valid rows.
    masks = (jnp.arange(B)[None, :] < (B - jnp.arange(T)[:, None] % B)
             ).astype(jnp.float32)                                 # (T, B)

    # PyTorch-layout LSTMCell parameters (gate order i, f, g, o).
    w_ih = 0.1 * jax.random.normal(k_wih, (4 * H, D_in), dtype=jnp.float32)
    w_hh = 0.1 * jax.random.normal(k_whh, (4 * H, H), dtype=jnp.float32)
    b_ih = 0.1 * jax.random.normal(k_bih, (4 * H,), dtype=jnp.float32)
    b_hh = 0.1 * jax.random.normal(k_bhh, (4 * H,), dtype=jnp.float32)

    # Fused/transposed weights are built ONCE here, not per step.
    params_f32 = prepare_params(w_ih, w_hh, b_ih, b_hh,
                                weights_dtype=jnp.float32)

    # --- single-step (module-equivalent) check ---
    out, (h1, c1) = decoder_forward(xs[0], masks[0], (h0, c0), params_f32)
    jax.block_until_ready((out, h1, c1))
    ref_out, (ref_h, ref_c) = _reference_step(xs[0], masks[0], (h0, c0),
                                              params_f32)
    assert jnp.allclose(out, ref_out, atol=1e-4, rtol=1e-4)
    assert jnp.allclose(h1, ref_h, atol=1e-4, rtol=1e-4)
    assert jnp.allclose(c1, ref_c, atol=1e-4, rtol=1e-4)

    # --- T-step sequence check (the loop internalized in one pallas_call) ---
    h_seq, (h_fin, c_fin) = masked_lstm_sequence(xs, masks, (h0, c0),
                                                 params_f32)
    jax.block_until_ready((h_seq, h_fin, c_fin))
    ref_seq, (ref_hf, ref_cf) = _reference_seq(xs, masks, (h0, c0), params_f32)
    assert jnp.allclose(h_seq, ref_seq, atol=1e-4, rtol=1e-4)
    assert jnp.allclose(h_fin, ref_hf, atol=1e-4, rtol=1e-4)
    assert jnp.allclose(c_fin, ref_cf, atol=1e-4, rtol=1e-4)

    # --- bf16-weight path (v6e/v7x MXU; activations/accumulation stay f32) ---
    params_bf16 = prepare_params(w_ih, w_hh, b_ih, b_hh,
                                 weights_dtype=jnp.bfloat16)
    h_seq_b, (h_fin_b, c_fin_b) = masked_lstm_sequence(xs, masks, (h0, c0),
                                                       params_bf16)
    jax.block_until_ready((h_seq_b, h_fin_b, c_fin_b))
    assert jnp.allclose(h_seq_b, ref_seq, atol=5e-2, rtol=5e-2)
    assert jnp.allclose(c_fin_b, ref_cf, atol=5e-2, rtol=5e-2)

    print("KERNEL_OK")
</pallas_src>

<mosaic_0001>
module attributes {stable_mosaic.version = 11 : i64} {
  func.func @_masked_lstm_seq_kernel(%arg0: i32, %arg1: memref<1x8x32xf32, #tpu.memory_space<vmem>>, %arg2: memref<1x8x1xf32, #tpu.memory_space<vmem>>, %arg3: memref<8x32xf32, #tpu.memory_space<vmem>>, %arg4: memref<8x32xf32, #tpu.memory_space<vmem>>, %arg5: memref<32x128xf32, #tpu.memory_space<vmem>>, %arg6: memref<32x128xf32, #tpu.memory_space<vmem>>, %arg7: memref<1x128xf32, #tpu.memory_space<vmem>>, %arg8: memref<1x8x32xf32, #tpu.memory_space<vmem>>, %arg9: memref<8x32xf32, #tpu.memory_space<vmem>>, %arg10: memref<8x32xf32, #tpu.memory_space<vmem>>, %arg11: memref<8x32xf32, #tpu.memory_space<vmem>>) attributes {dimension_semantics = [#tpu.dimension_semantics<arbitrary>], iteration_bounds = array<i64: 1>, scalar_prefetch = 0 : i64, scratch_operands = 2 : i64, tpu.core_type = #tpu.core_type<tc>, window_params = [{transform_indices = @transform_0, window_bounds = array<i64: 1, 8, 32>}, {transform_indices = @transform_1, window_bounds = array<i64: 1, 8, 1>}, {pipeline_mode = #tpu.pipeline_mode<synchronous>, transform_indices = @transform_2, window_bounds = array<i64: 8, 32>}, {pipeline_mode = #tpu.pipeline_mode<synchronous>, transform_indices = @transform_3, window_bounds = array<i64: 8, 32>}, {pipeline_mode = #tpu.pipeline_mode<synchronous>, transform_indices = @transform_4, window_bounds = array<i64: 32, 128>}, {pipeline_mode = #tpu.pipeline_mode<synchronous>, transform_indices = @transform_5, window_bounds = array<i64: 32, 128>}, {pipeline_mode = #tpu.pipeline_mode<synchronous>, transform_indices = @transform_6, window_bounds = array<i64: 1, 128>}, {transform_indices = @transform_7, window_bounds = array<i64: 1, 8, 32>}, {pipeline_mode = #tpu.pipeline_mode<synchronous>, transform_indices = @transform_8, window_bounds = array<i64: 8, 32>}]} {
    %c0_i32 = arith.constant 0 : i32
    %0 = arith.cmpi eq, %arg0, %c0_i32 : i32
    %1 = arith.extui %0 : i1 to i32
    %c0_i32_0 = arith.constant 0 : i32
    %2 = arith.cmpi ne, %1, %c0_i32_0 : i32
    scf.if %2 {
      %c0_28 = arith.constant 0 : index
      %c0_29 = arith.constant 0 : index
      %48 = vector.load %arg3[%c0_28, %c0_29] : memref<8x32xf32, #tpu.memory_space<vmem>>, vector<8x32xf32>
      %c0_30 = arith.constant 0 : index
      %c0_31 = arith.constant 0 : index
      %49 = vector.load %arg10[%c0_30, %c0_31] : memref<8x32xf32, #tpu.memory_space<vmem>>, vector<8x32xf32>
      tpu.vector_store %arg10[%c0_30, %c0_31], %48 {strides = array<i32>} : memref<8x32xf32, #tpu.memory_space<vmem>>, vector<8x32xf32>,
      %c0_32 = arith.constant 0 : index
      %c0_33 = arith.constant 0 : index
      %50 = vector.load %arg4[%c0_32, %c0_33] : memref<8x32xf32, #tpu.memory_space<vmem>>, vector<8x32xf32>
      %c0_34 = arith.constant 0 : index
      %c0_35 = arith.constant 0 : index
      %51 = vector.load %arg11[%c0_34, %c0_35] : memref<8x32xf32, #tpu.memory_space<vmem>>, vector<8x32xf32>
      tpu.vector_store %arg11[%c0_34, %c0_35], %50 {strides = array<i32>} : memref<8x32xf32, #tpu.memory_space<vmem>>, vector<8x32xf32>,
    } else {
    }
    %c0 = arith.constant 0 : index
    %c0_1 = arith.constant 0 : index
    %3 = vector.load %arg10[%c0, %c0_1] : memref<8x32xf32, #tpu.memory_space<vmem>>, vector<8x32xf32>
    %c0_2 = arith.constant 0 : index
    %c0_3 = arith.constant 0 : index
    %4 = vector.load %arg11[%c0_2, %c0_3] : memref<8x32xf32, #tpu.memory_space<vmem>>, vector<8x32xf32>
    %c0_4 = arith.constant 0 : index
    %c0_5 = arith.constant 0 : index
    %c0_6 = arith.constant 0 : index
    %5 = vector.load %arg1[%c0_4, %c0_5, %c0_6] : memref<1x8x32xf32, #tpu.memory_space<vmem>>, vector<1x8x32xf32>
    %6 = vector.shape_cast %5 : vector<1x8x32xf32> to vector<8x32xf32>
    %c0_7 = arith.constant 0 : index
    %c0_8 = arith.constant 0 : index
    %7 = vector.load %arg5[%c0_7, %c0_8] : memref<32x128xf32, #tpu.memory_space<vmem>>, vector<32x128xf32>
    %cst = arith.constant dense<0.000000e+00> : vector<8x128xf32>
    %8 = tpu.matmul %6, %7, %cst {dimension_numbers = #tpu.dot_dimension_numbers<[1], [0], [0], [1], [0, 0, 1, 1], [], []>} : vector<8x32xf32>, vector<32x128xf32>, vector<8x128xf32> -> vector<8x128xf32>
    %c0_9 = arith.constant 0 : index
    %c0_10 = arith.constant 0 : index
    %9 = vector.load %arg6[%c0_9, %c0_10] : memref<32x128xf32, #tpu.memory_space<vmem>>, vector<32x128xf32>
    %cst_11 = arith.constant dense<0.000000e+00> : vector<8x128xf32>
    %10 = tpu.matmul %3, %9, %cst_11 {dimension_numbers = #tpu.dot_dimension_numbers<[1], [0], [0], [1], [0, 0, 1, 1], [], []>} : vector<8x32xf32>, vector<32x128xf32>, vector<8x128xf32> -> vector<8x128xf32>
    %11 = arith.addf %8, %10 : vector<8x128xf32>
    %c0_12 = arith.constant 0 : index
    %c0_13 = arith.constant 0 : index
    %12 = vector.load %arg7[%c0_12, %c0_13] : memref<1x128xf32, #tpu.memory_space<vmem>>, vector<1x128xf32>
    %13 = vector.broadcast %12 : vector<1x128xf32> to vector<8x128xf32>
    %14 = arith.addf %11, %13 : vector<8x128xf32>
    %15 = arith.negf %14 : vector<8x128xf32>
    %16 = math.exp %15 : vector<8x128xf32>
    %cst_14 = arith.constant 1.000000e+00 : f32
    %17 = vector.broadcast %cst_14 : f32 to vector<8x128xf32>
    %18 = arith.addf %17, %16 : vector<8x128xf32>
    %19 = arith.divf %17, %18 : vector<8x128xf32>
    %20 = vector.extract_strided_slice %19 {offsets = [0, 0], sizes = [8, 32], strides = [1, 1]} : vector<8x128xf32> to vector<8x32xf32>
    %21 = vector.extract_strided_slice %19 {offsets = [0, 32], sizes = [8, 32], strides = [1, 1]} : vector<8x128xf32> to vector<8x32xf32>
    %22 = vector.extract_strided_slice %19 {offsets = [0, 96], sizes = [8, 32], strides = [1, 1]} : vector<8x128xf32> to vector<8x32xf32>
    %23 = vector.extract_strided_slice %14 {offsets = [0, 64], sizes = [8, 32], strides = [1, 1]} : vector<8x128xf32> to vector<8x32xf32>
    %24 = math.tanh %23 : vector<8x32xf32>
    %25 = arith.mulf %21, %4 : vector<8x32xf32>
    %26 = arith.mulf %20, %24 : vector<8x32xf32>
    %27 = arith.addf %25, %26 : vector<8x32xf32>
    %28 = math.tanh %27 : vector<8x32xf32>
    %29 = arith.mulf %22, %28 : vector<8x32xf32>
    %c0_15 = arith.constant 0 : index
    %c0_16 = arith.constant 0 : index
    %c0_17 = arith.constant 0 : index
    %30 = vector.load %arg2[%c0_15, %c0_16, %c0_17] : memref<1x8x1xf32, #tpu.memory_space<vmem>>, vector<1x8x1xf32>
    %31 = vector.shape_cast %30 : vector<1x8x1xf32> to vector<8x1xf32>
    %cst_18 = arith.constant 0.000000e+00 : f32
    %32 = vector.broadcast %cst_18 : f32 to vector<8x1xf32>
    %33 = arith.cmpf ogt, %31, %32 : vector<8x1xf32>
    %34 = vector.shape_cast %33 : vector<8x1xi1> to vector<8x1xi1>
    %35 = vector.broadcast %34 : vector<8x1xi1> to vector<8x32xi1>
    %36 = arith.select %35, %29, %3 : vector<8x32xi1>, vector<8x32xf32>
    %37 = vector.shape_cast %33 : vector<8x1xi1> to vector<8x1xi1>
    %38 = vector.broadcast %37 : vector<8x1xi1> to vector<8x32xi1>
    %39 = arith.select %38, %27, %4 : vector<8x32xi1>, vector<8x32xf32>
    %c0_19 = arith.constant 0 : index
    %c0_20 = arith.constant 0 : index
    %40 = vector.load %arg10[%c0_19, %c0_20] : memref<8x32xf32, #tpu.memory_space<vmem>>, vector<8x32xf32>
    tpu.vector_store %arg10[%c0_19, %c0_20], %36 {strides = array<i32>} : memref<8x32xf32, #tpu.memory_space<vmem>>, vector<8x32xf32>,
    %c0_21 = arith.constant 0 : index
    %c0_22 = arith.constant 0 : index
    %41 = vector.load %arg11[%c0_21, %c0_22] : memref<8x32xf32, #tpu.memory_space<vmem>>, vector<8x32xf32>
    tpu.vector_store %arg11[%c0_21, %c0_22], %39 {strides = array<i32>} : memref<8x32xf32, #tpu.memory_space<vmem>>, vector<8x32xf32>,
    %c0_23 = arith.constant 0 : index
    %c0_24 = arith.constant 0 : index
    %c0_25 = arith.constant 0 : index
    %42 = vector.load %arg8[%c0_23, %c0_24, %c0_25] : memref<1x8x32xf32, #tpu.memory_space<vmem>>, vector<1x8x32xf32>
    %43 = vector.shape_cast %42 : vector<1x8x32xf32> to vector<8x32xf32>
    %44 = vector.shape_cast %36 : vector<8x32xf32> to vector<1x8x32xf32>
    tpu.vector_store %arg8[%c0_23, %c0_24, %c0_25], %44 {strides = array<i32>} : memref<1x8x32xf32, #tpu.memory_space<vmem>>, vector<1x8x32xf32>,
    %c0_i32_26 = arith.constant 0 : i32
    %45 = arith.cmpi eq, %arg0, %c0_i32_26 : i32
    %46 = arith.extui %45 : i1 to i32
    %c0_i32_27 = arith.constant 0 : i32
    %47 = arith.cmpi ne, %46, %c0_i32_27 : i32
    scf.if %47 {
      %c0_28 = arith.constant 0 : index
      %c0_29 = arith.constant 0 : index
      %48 = vector.load %arg9[%c0_28, %c0_29] : memref<8x32xf32, #tpu.memory_space<vmem>>, vector<8x32xf32>
      tpu.vector_store %arg9[%c0_28, %c0_29], %39 {strides = array<i32>} : memref<8x32xf32, #tpu.memory_space<vmem>>, vector<8x32xf32>,
    } else {
    }
    return
  }
  func.func @transform_0(%arg0: i32) -> (i32, i32, i32) {
    %c0_i32 = arith.constant 0 : i32
    %c0_i32_0 = arith.constant 0 : i32
    %c0_i32_1 = arith.constant 0 : i32
    return %arg0, %c0_i32, %c0_i32_0 : i32, i32, i32
  }
  func.func @transform_1(%arg0: i32) -> (i32, i32, i32) {
    %c0_i32 = arith.constant 0 : i32
    %c0_i32_0 = arith.constant 0 : i32
    %c0_i32_1 = arith.constant 0 : i32
    return %arg0, %c0_i32, %c0_i32_0 : i32, i32, i32
  }
  func.func @transform_2(%arg0: i32) -> (i32, i32) {
    %c0_i32 = arith.constant 0 : i32
    %c0_i32_0 = arith.constant 0 : i32
    %c0_i32_1 = arith.constant 0 : i32
    return %c0_i32, %c0_i32_0 : i32, i32
  }
  func.func @transform_3(%arg0: i32) -> (i32, i32) {
    %c0_i32 = arith.constant 0 : i32
    %c0_i32_0 = arith.constant 0 : i32
    %c0_i32_1 = arith.constant 0 : i32
    return %c0_i32, %c0_i32_0 : i32, i32
  }
  func.func @transform_4(%arg0: i32) -> (i32, i32) {
    %c0_i32 = arith.constant 0 : i32
    %c0_i32_0 = arith.constant 0 : i32
    %c0_i32_1 = arith.constant 0 : i32
    return %c0_i32, %c0_i32_0 : i32, i32
  }
  func.func @transform_5(%arg0: i32) -> (i32, i32) {
    %c0_i32 = arith.constant 0 : i32
    %c0_i32_0 = arith.constant 0 : i32
    %c0_i32_1 = arith.constant 0 : i32
    return %c0_i32, %c0_i32_0 : i32, i32
  }
  func.func @transform_6(%arg0: i32) -> (i32, i32) {
    %c0_i32 = arith.constant 0 : i32
    %c0_i32_0 = arith.constant 0 : i32
    %c0_i32_1 = arith.constant 0 : i32
    return %c0_i32, %c0_i32_0 : i32, i32
  }
  func.func @transform_7(%arg0: i32) -> (i32, i32, i32) {
    %c0_i32 = arith.constant 0 : i32
    %c0_i32_0 = arith.constant 0 : i32
    %c0_i32_1 = arith.constant 0 : i32
    return %arg0, %c0_i32, %c0_i32_0 : i32, i32, i32
  }
  func.func @transform_8(%arg0: i32) -> (i32, i32) {
    %c0_i32 = arith.constant 0 : i32
    %c0_i32_0 = arith.constant 0 : i32
    %c0_i32_1 = arith.constant 0 : i32
    return %c0_i32, %c0_i32_0 : i32, i32
  }
}

</mosaic_0001>

<bundles_post_ra>
// kernel: masked_lstm_sequence.1
= control target key start
LH: loop header
LB: loop body
LE: loop exit
PB: predicated region body
PF: predicated region fallthrough
CT: control target
= control target key end

     0   :  { %14 = vsyncpa [#allocation5], 0  ;;  %s571_s0 = inlined_call_operand.vmem [shape: f32[1,8,32], index: 0, kind: input, shape index: {}]   ;;  %s572_s1 = inlined_call_operand.vmem [shape: f32[1,8,1], index: 1, kind: input, shape index: {}]   ;;  %s573_s2 = inlined_call_operand.vmem [shape: f32[8,32], index: 2, kind: input, shape index: {}]   ;;  %s574_s3 = inlined_call_operand.vmem [shape: f32[8,32], index: 3, kind: input, shape index: {}]   ;;  %s575_s4 = inlined_call_operand.hbm [shape: f32[32,128], index: 4, kind: input, shape index: {}]   ;;  %s576_s5 = inlined_call_operand.hbm [shape: f32[32,128], index: 5, kind: input, shape index: {}]   ;;  %s577_s6 = inlined_call_operand.vmem [shape: f32[1,128], index: 6, kind: input, shape index: {}]   ;;  %s578_s7 = inlined_call_operand.vmem [shape: f32[1,8,32], index: 7, kind: output, shape index: {0}]   ;;  %s579_s8 = inlined_call_operand.hbm [shape: f32[8,32], index: 8, kind: output, shape index: {1}]  }
   0x1   :  { %15 = vsyncpa [#allocation8], 0 }
   0x2   :  { %16 = vsyncpa [#allocation6], 0  ;;  %s449_s27 = smov [#allocation4]   ;;  %s377_s9 = scalar_lea.hbm %s575_s4, 512 }
   0x3   :  { %s30_s28 = sshll.u32 %s449_s27, 4  ;;  %p378_p0 = scmp.ne.s32.totalorder %s575_s4, %s377_s9  ;;  %s31_s28 = int_to_ptr.vmem [resolvable:$true] %s30_s28 }
   0x4   :  { %p381_p1 = scmp.lt.u32.totalorder %s377_s9, %s575_s4 }
   0x6   :  { %p383_p2 = pnand %p381_p1, %p378_p0 }
   0x8   :  { %386 = shalt.err (!%p383_p2)
}
   0x9   :  { %s387_s14 = scalar_lea.vmem %s31_s28, 512  ;;  %p392_p4 = scmp.lt.s32.totalorder %s31_s28, %s31_s28 }
   0xa   :  { %p388_p3 = scmp.ne.s32.totalorder %s31_s28, %s387_s14  ;;  %p393_p5 = scmp.lt.s32.totalorder %s387_s14, %s387_s14 }
   0xc   :  { %p394_p6 = por %p393_p5, %p392_p4 }
   0xe   :  { %p395_p7 = pnand %p394_p6, %p388_p3 }
  0x10   :  { %398 = shalt.err (!%p395_p7)
}
  0x11   :  { %s450_s15 = smov 128   ;;  %s451_s16 = smov 8  }
  0x12   :  { %36 = dma.hbm_to_vmem [thread:$0]  %s575_s4, 512, %s31_s28, [#allocation5], %s450_s15, %s450_s15, %s451_s16  }
  0x13   :  { %s452_s19 = smov [#allocation7]   ;;  %s399_s23 = scalar_lea.hbm %s576_s5, 512 }
  0x14   :  { %s42_s20 = sshll.u32 %s452_s19, 4  ;;  %p400_p8 = scmp.ne.s32.totalorder %s576_s5, %s399_s23  ;;  %s43_s20 = int_to_ptr.vmem [resolvable:$true] %s42_s20 }
  0x15   :  { %p403_p9 = scmp.lt.u32.totalorder %s399_s23, %s576_s5 }
  0x17   :  { %p405_p10 = pnand %p403_p9, %p400_p8 }
  0x19   :  { %408 = shalt.err (!%p405_p10)
}
  0x1a   :  { %s409_s29 = scalar_lea.vmem %s43_s20, 512  ;;  %p414_p12 = scmp.lt.s32.totalorder %s43_s20, %s43_s20 }
  0x1b   :  { %p410_p11 = scmp.ne.s32.totalorder %s43_s20, %s409_s29  ;;  %p415_p13 = scmp.lt.s32.totalorder %s409_s29, %s409_s29 }
  0x1d   :  { %p416_p0 = por %p415_p13, %p414_p12 }
  0x1f   :  { %p417_p1 = pnand %p416_p0, %p410_p11 }
  0x21   :  { %420 = shalt.err (!%p417_p1)
}
  0x22   :  { %48 = dma.hbm_to_vmem [thread:$0]  %s576_s5, 512, %s43_s20, [#allocation8], %s450_s15, %s450_s15, %s451_s16  }
  0x23   :  { %443 = dma.done.wait [#allocation5], 512  }
  0x24   :  { %444 = vsyncadd [#allocation5], 4294966784 }
  0x25   :  { %445 = dma.done.wait [#allocation8], 512  }
  0x26   :  { %446 = vsyncadd [#allocation8], 4294966784  ;;  %v453_v0 = vmov 0.0|0.0   ;;  %vm454_vm0 = vmmov 0   ;;  %v455_v1 = vmov 0.0   ;;  %v73_v2 = vld [vmem:[#allocation7] sm:$0xff] }
  0x27   :  { %343 = vmatprep.subr.bf16.mxu0 %v453_v0  ;;  %349 = vmatprep.subr.bf16.mxu1 %v453_v0  ;;  %v74_v3 = vld [vmem:[#allocation7 + $0x8] sm:$0xff]  ;;  %v69_v4 = vld [vmem:[#allocation4] sm:$0xff]  ;;  %vm62_vm1 = vcmask 261120   ;;  %v75_v7 = vld [vmem:[#allocation7 + $0x10] sm:$0xff]  ;;  %v456_v25 = vmov 0   ;;  %s458_s13 = smov 32  }
  0x28   :  { %329 = vmatprep.mubr.msk.f32.mxu0 %vm454_vm0, %v455_v1  ;;  %340 = vmatprep.mubr.msk.f32.mxu1 %vm454_vm0, %v455_v1  ;;  %v344_v5 = vpack.c.bf16 %v74_v3, %v73_v2  ;;  %v70_v6 = vld [vmem:[#allocation4 + $0x8] sm:$0xff]  ;;  %v76_v8 = vld [vmem:[#allocation7 + $0x18] sm:$0xff]  ;;  %v71_v10 = vld [vmem:[#allocation4 + $0x10] sm:$0xff]  ;;  %s459_s15 = smov 96  }
  0x29   :  { %v350_v9 = vpack.c.bf16 %v70_v6, %v69_v4  ;;  %v72_v11 = vld [vmem:[#allocation4 + $0x18] sm:$0xff]  ;;  %v61_v12 = vld [vmem:[%s573_s2] sm:$0xff]  ;;  %v347_v13 = vpack.c.bf16 %v76_v8, %v75_v7  ;;  %367 = vset.pattern.permute.xlu1 %v456_v25  ;;  %368 = vset.pattern.permute.xlu0 %v456_v25 }
  0x2a   :  { %345 = vmatpush3.bf16.msra.mxu0 %v344_v5  ;;  %63 = vst.msk [vmem:[#allocation2] sm:$0xff] %vm62_vm1, %v61_v12  ;;  %v64_v14 = vld [vmem:[%s574_s3] sm:$0xff]  ;;  %v353_v15 = vpack.c.bf16 %v72_v11, %v71_v10 }
  0x2b   :  { %351 = vmatpush3.bf16.msra.mxu1 %v350_v9  ;;  %346 = vmatprep.subr.bf16.mxu0 %v453_v0  ;;  %65 = vst.msk [vmem:[#allocation3] sm:$0xff] %vm62_vm1, %v64_v14  ;;  %v68_v16 = vld [vmem:[%s571_s0] sm:$0xff]  ;;  %s457_s0 = smov 64  }
  0x2c   :  { %352 = vmatprep.subr.bf16.mxu1 %v453_v0  ;;  %v309_v20 = vld [vmem:[%s577_s6] ss:$0 sm:$0xff] }
  0x2d   :  { %v260_v31 = vld [vmem:[%s572_s1] sm:$0xff]  ;;  %s460_s1 = smov [#allocation9]  }
  0x2e   :  { %348 = vmatpush3.bf16.msra.mxu0 %v347_v13  ;;  %vm261_vm2 = vcmp.gt.f32.partialorder %v260_v31, 0.0  ;;  %s295_s16 = sshll.u32 %s460_s1, 4  ;;  %s296_s16 = int_to_ptr.vmem [resolvable:$true] %s295_s16 }
  0x2f   :  { %354 = vmatpush3.bf16.msra.mxu1 %v353_v15  ;;  %v262_v35 = vsel %vm261_vm2, 1, %v456_v25  ;;  %s421_s17 = scalar_lea.vmem %s296_s16, 128  ;;  %p426_p3 = scmp.lt.s32.totalorder %s296_s16, %s296_s16 }
  0x30   :  { %p422_p2 = scmp.ne.s32.totalorder %s296_s16, %s421_s17  ;;  %p427_p4 = scmp.lt.s32.totalorder %s421_s17, %s421_s17 }
  0x31   :  { %v66_v17 = vld [vmem:[#allocation2] sm:$0xff] }
  0x32   :  { %330 = vmatmul.mubr.msk.f32.vlgmr.msra.gmra.mrb[0].mxu0 %vm62_vm1, %v66_v17  ;;  %341 = vmatmul.mubr.msk.f32.vlgmr.msra.gmra.mrb[0].mxu1 %vm62_vm1, %v68_v16  ;;  %v67_v27 = vld [vmem:[#allocation3] sm:$0xff]  ;;  %p428_p5 = por %p427_p4, %p426_p3 }
  0x34   :  { %p429_p6 = pnand %p428_p5, %p422_p2 }
 0x105   :  { %v147_v18 = vpop.f32.mrb[0].mxu0  ;;  %v220_v19 = vpop.f32.mrb[0].mxu1 }
 0x106   :  { %v221_v21 = vadd.f32 %v220_v19, %v147_v18  ;;  %v331_v22 = vpop.f32.mrb[1].mxu0  ;;  %v342_v23 = vpop.f32.mrb[1].mxu1 }
 0x108   :  { %v231_v24 = vadd.f32 %v309_v20, %v221_v21 }
 0x10a   :  { %369 = vtanh.f32 %v231_v24  ;;  %v310_v28 = vmul.f32 -1.442695, %v231_v24 }
 0x10c   :  { %371 = vpow2.f32 %v310_v28 }
 0x114   :  { %v370_v26 = vpop.eup %369 }
 0x115   :  { %245 = vrot.lane.b32.xlu0 %v370_v26, %s457_s0 }
 0x116   :  { %v372_v29 = vpop.eup %371 }
 0x117   :  { %v235_v30 = vadd.f32 1.0, %v372_v29 }
 0x119   :  { %240 = vrot.lane.b32.xlu0 %v67_v27, %s458_s13  ;;  %373 = vrcp.f32 %v235_v30 }
 0x123   :  { %v374_v32 = vpop.eup %373 }
 0x187   :  { %v246_v33 = vpop.permute.xlu0 %245 }
 0x188   :  { %v248_v34 = vmul.f32 %v374_v32, %v246_v33 }
 0x18a   :  { %250 = vrot.lane.b32.xlu1 %v248_v34, %s458_s13 }
 0x18b   :  { %v241_v36 = vpop.permute.xlu0 %240 }
 0x18c   :  { %v243_v37 = vmul.f32 %v374_v32, %v241_v36 }
 0x18e   :  { %264 = vperm.xlu1 %367, %v262_v35  }
 0x192   :  { %267 = vrot.lane.b32.xlu1 %v66_v17, %s459_s15 }
 0x1fc   :  { %v251_v38 = vpop.permute.xlu1 %250 }
 0x1fd   :  { %v253_v39 = vadd.f32 %v251_v38, %v243_v37 }
 0x1ff   :  { %375 = vtanh.f32 %v253_v39 }
 0x209   :  { %v376_v40 = vpop.eup %375 }
 0x20a   :  { %256 = vrot.lane.b32.xlu0 %v376_v40, %s457_s0 }
 0x20d   :  { %v265_v41 = vpop.permute.xlu1 %264 }
 0x20e   :  { %vm266_vm3 = vcmp.eq.s32.totalorder %v265_v41, 1 }
 0x20f   :  { %v271_v42 = vsel %vm266_vm3, %v253_v39, %v241_v36 }
 0x210   :  { %278 = vrot.lane.b32.xlu0 %v271_v42, %s459_s15 }
 0x211   :  { %v268_v44 = vpop.permute.xlu1 %267 }
 0x27c   :  { %v257_v43 = vpop.permute.xlu0 %256 }
 0x27d   :  { %v259_v45 = vmul.f32 %v374_v32, %v257_v43 }
 0x27f   :  { %v270_v46 = vsel %vm266_vm3, %v259_v45, %v268_v44 }
 0x280   :  { %273 = vrot.lane.b32.xlu1 %v270_v46, %s458_s13 }
 0x282   :  { %v279_v47 = vpop.permute.xlu0 %278 }
 0x283   :  { %281 = vst.msk [vmem:[#allocation3] sm:$0xff] %vm62_vm1, %v279_v47  ;;  %286 = vst.msk [vmem:[#allocation9] sm:$0xff] %vm62_vm1, %v279_v47 }
 0x284   :  { %432 = shalt.err (!%p429_p6)
}
 0x285   :  { %s433_s20 = scalar_lea.hbm %s579_s8, 128 }
 0x286   :  { %p434_p7 = scmp.ne.s32.totalorder %s579_s8, %s433_s20  ;;  %p437_p8 = scmp.lt.u32.totalorder %s433_s20, %s579_s8 }
 0x288   :  { %p439_p9 = pnand %p437_p8, %p434_p7 }
 0x28a   :  { %442 = shalt.err (!%p439_p9)
}
 0x28b   :  { %298 = dma.vmem_to_hbm [thread:$0]  %s296_s16, 128, %s579_s8, [#allocation6]  }
 0x2f2   :  { %v274_v48 = vpop.permute.xlu1 %273 }
 0x2f3   :  { %276 = vst.msk [vmem:[#allocation2] sm:$0xff] %vm62_vm1, %v274_v48  ;;  %282 = vst.msk [vmem:[%s578_s7] sm:$0xff] %vm62_vm1, %v274_v48 }
 0x2f4   :  { %447 = dma.done.wait [#allocation6], 128  }
 0x2f5   :  { %448 = vsyncadd [#allocation6], 4294967168 }
 0x2f6   :  { %304 = vsyncpa [#allocation5], 1 }
 0x2f7   :  { %305 = vsyncpa [#allocation8], 1 }
 0x2f8   :  { %306 = vsyncpa [#allocation6], 1 }

</bundles_post_ra>
